<compile_context>
chip_gen: v5e
topology: v5e:2x2
jax: 0.10.0
libtpu: 0.0.40
codegen_flags: <defaults>
</compile_context>

<pallas_src>
import functools

import jax
import jax.numpy as jnp
from jax import lax
from jax.experimental import pallas as pl
from jax.experimental.pallas import tpu as pltpu

_MIB = 1024 * 1024


def _round_up(x, m):
    return ((x + m - 1) // m) * m


def _tpu_generation():
    try:
        kind = jax.devices()[0].device_kind.lower()
    except Exception:
        return None
    for gen in ("v7", "v6", "v5"):
        if gen in kind:
            return gen
    return None


def _vmem_capacity_bytes():
    try:
        return int(pltpu.get_tpu_info().vmem_capacity_bytes)
    except Exception:
        return 64 * _MIB      # conservative fallback (v7x per-TC VMEM)


# ---------------------------------------------------------------------------
# Fused kernel: adjacency normalization + all GCN layers for one batch block
# ---------------------------------------------------------------------------
def _fused_gcn_kernel(*refs, num_layers, b_blk, n, block_diag):
    adj_ref, x_ref = refs[0], refs[1]
    w_refs = [refs[2 + 2 * l] for l in range(num_layers)]
    b_refs = [refs[3 + 2 * l] for l in range(num_layers)]
    out_ref = refs[2 + 2 * num_layers]
    s_ref = refs[3 + 2 * num_layers]
    bn = b_blk * n

    # ---- normalized adjacency for every graph of the block, fully batched ----
    a_bin = adj_ref[...].astype(jnp.float32)                    # wrapper pre-binarized 0/1
    eye = (lax.broadcasted_iota(jnp.int32, (n, n), 0) ==
           lax.broadcasted_iota(jnp.int32, (n, n), 1))          # [n, n], built once
    a_hat = jnp.where(eye[None], 1.0, a_bin)                    # force self loops
    deg = jnp.sum(a_hat, axis=1, keepdims=True)                 # [b,1,n] in-degree (XLU)
    dinv = lax.rsqrt(deg)                                       # EUP
    # Column-oriented copy of dinv ([b,n,1]) via mask + lane-reduce on a tiny slab
    # (avoids relying on a rank-3 relayout/transpose).
    dinv_col = jnp.sum(jnp.where(eye[None], dinv, 0.0), axis=2, keepdims=True)
    s = (dinv_col * a_hat * dinv).astype(s_ref.dtype)           # S[b,j,i] == M[b,i,j]

    if block_diag:
        # Pack the b_blk graphs on the diagonal of one [bn, bn] matrix so each layer's
        # aggregation is a single MXU-filling matmul instead of b_blk tiny [n,n] ones.
        s_ref[...] = jnp.zeros_like(s_ref)
        for b in range(b_blk):                                  # stores only, no compute/concat
            s_ref[b * n:(b + 1) * n, b * n:(b + 1) * n] = s[b]
    else:
        s_ref[...] = s

    # ---- layer stack; h lives entirely on-chip as a [bn, F] slab ----
    h = x_ref[...].reshape(bn, x_ref.shape[2]).astype(jnp.float32)
    for layer in range(num_layers):
        w = w_refs[layer][...]                                  # padded, mxu dtype
        bias = b_refs[layer][...]                               # [1, f_out_pad] f32
        # Shared feature transform for all graphs in the block (one big MXU matmul).
        hw = jnp.dot(h.astype(w.dtype), w, preferred_element_type=jnp.float32)
        # Aggregation  M @ hW == S^T @ hW : contract the row dim of S with the row dim
        # of hW so the MXU absorbs the transpose (no XLU transpose, no M^T materialized).
        if block_diag:
            agg = lax.dot_general(s_ref[...], hw.astype(s_ref.dtype),
                                  (((0,), (0,)), ((), ())),
                                  preferred_element_type=jnp.float32)        # [bn, f]
        else:
            agg = lax.dot_general(s_ref[...],
                                  hw.reshape(b_blk, n, hw.shape[1]).astype(s_ref.dtype),
                                  (((1,), (1,)), ((0,), (0,))),
                                  preferred_element_type=jnp.float32
                                  ).reshape(bn, hw.shape[1])                 # [bn, f]
        y = agg + bias
        if layer + 1 < num_layers:
            # ELU(alpha=1); min() keeps the discarded branch from overflowing.
            h = jnp.where(y > 0.0, y, jnp.exp(jnp.minimum(y, 0.0)) - 1.0)
            # TODO(synk): F.dropout(p=0.2) between layers is identity in eval mode; not applied.
        else:
            out_ref[...] = y.reshape(b_blk, n, y.shape[1]).astype(out_ref.dtype)


# ---------------------------------------------------------------------------
# Forward pass of GATComm
# ---------------------------------------------------------------------------
def gat_comm_forward(x, adj, weights, biases, *, mxu_dtype=jnp.float32):
    """x: [B, N, F_in], adj: [B, N, N].
    mxu_dtype=jnp.bfloat16 recommended on v6e/v7x (faster MXU, half S/W VMEM) at the
    cost of bf16 quantization error."""
    B, N, f_in = x.shape
    num_layers = len(weights)
    itm = jnp.dtype(mxu_dtype).itemsize

    # ---- layout-friendly padding ----
    sub = 8 if itm == 4 else 16                                 # sublane tile of the S dtype
    n_pad = _round_up(N, 128) if N >= 64 else _round_up(N, sub)
    f_outs = [int(w.shape[1]) for w in weights]
    f_out_pads = [_round_up(f, 128) for f in f_outs]
    f_in_dims = [f_in] + f_out_pads[:-1]                        # per-layer (padded) input widths
    f_out_last = f_out_pads[-1]

    # Binarize BEFORE downcasting (tiny edge weights must not flush to zero), then stream
    # adjacency as bf16: kernel only needs edge/no-edge; halves HBM traffic + VMEM block.
    adj_stream = (adj != 0).astype(jnp.bfloat16)
    if n_pad != N:
        x = jnp.pad(x, ((0, 0), (0, n_pad - N), (0, 0)))
        adj_stream = jnp.pad(adj_stream, ((0, 0), (0, n_pad - N), (0, n_pad - N)))

    w_pad, b_pad = [], []
    for l, (w, b) in enumerate(zip(weights, biases)):
        fi, fo = int(w.shape[0]), int(w.shape[1])
        fi_p, fo_p = f_in_dims[l], f_out_pads[l]
        wp = jnp.zeros((fi_p, fo_p), mxu_dtype).at[:fi, :fo].set(jnp.asarray(w, mxu_dtype))
        bp = jnp.zeros((1, fo_p), jnp.float32).at[:, :fo].set(
            jnp.asarray(b, jnp.float32).reshape(1, fo))
        w_pad.append(wp)
        b_pad.append(bp)

    # ---- generation-aware, VMEM-aware tiling ----
    gen = _tpu_generation()
    vmem_cap = _vmem_capacity_bytes()
    two_tc = gen == "v7"                       # only v7x has 2 TCs -> keep >=2 grid steps there
    row_target = 128 if gen == "v5" else 256   # MXU height to fill with h@W rows
    block_diag = n_pad < 128
    max_f_pad = max(f_out_pads)
    adj_itm = jnp.dtype(adj_stream.dtype).itemsize
    wb_bytes = 2 * sum(int(wp.size) * itm + int(bp.size) * 4
                       for wp, bp in zip(w_pad, b_pad))

    def vmem_bytes(b_blk):
        bn = b_blk * n_pad
        s_bytes = (bn * bn if block_diag else b_blk * n_pad * n_pad) * itm
        return (2 * b_blk * n_pad * n_pad * adj_itm      # adj blocks (double-buffered)
                + 2 * b_blk * n_pad * f_in * 4           # x blocks
                + 2 * b_blk * n_pad * f_out_last * 4     # out blocks
                + wb_bytes                               # weights / biases
                + s_bytes                                # normalized-adjacency scratch
                + 4 * bn * max_f_pad * 4)                # live h / hw / agg headroom

    budget = int(0.6 * vmem_cap)
    max_bd = max(1, 256 // n_pad) if block_diag else B   # cap zero-MAC waste of block-diag
    divisors = [d for d in range(1, B + 1) if B % d == 0]
    fits = [d for d in divisors if d <= max_bd and vmem_bytes(d) <= budget] or [1]
    b_blk = fits[-1]
    for d in fits:
        if d * n_pad >= row_target:
            b_blk = d
            break
    if two_tc and B // b_blk < 2:
        smaller = [d for d in fits if B // d >= 2]
        if smaller:
            b_blk = smaller[-1]

    grid = (B // b_blk,)
    bn = b_blk * n_pad
    s_shape = (bn, bn) if block_diag else (b_blk, n_pad, n_pad)

    in_specs = [
        pl.BlockSpec((b_blk, n_pad, n_pad), lambda g: (g, 0, 0)),
        pl.BlockSpec((b_blk, n_pad, f_in), lambda g: (g, 0, 0)),
    ]
    wb_inputs = []
    for wp, bp in zip(w_pad, b_pad):
        # Constant index_map -> weights/biases stay resident across grid steps.
        # TODO(synk): pipeline_mode=pl.Buffered(1) would halve their VMEM reservation.
        in_specs.append(pl.BlockSpec(wp.shape, lambda g: (0, 0)))
        in_specs.append(pl.BlockSpec(bp.shape, lambda g: (0, 0)))
        wb_inputs.extend([wp, bp])
    out_specs = pl.BlockSpec((b_blk, n_pad, f_out_last), lambda g: (g, 0, 0))

    vmem_limit = int(min(int(0.85 * vmem_cap), max(32 * _MIB, 2 * vmem_bytes(b_blk))))

    kernel = functools.partial(_fused_gcn_kernel, num_layers=num_layers,
                               b_blk=b_blk, n=n_pad, block_diag=block_diag)
    out = pl.pallas_call(
        kernel,
        out_shape=jax.ShapeDtypeStruct((B, n_pad, f_out_last), jnp.float32),
        grid=grid,
        in_specs=in_specs,
        out_specs=out_specs,
        scratch_shapes=[pltpu.VMEM(s_shape, mxu_dtype)],
        compiler_params=pltpu.CompilerParams(
            dimension_semantics=("parallel",),
            vmem_limit_bytes=vmem_limit,
        ),
    )(adj_stream, x, *wb_inputs)

    if n_pad != N or f_out_last != f_outs[-1]:
        out = out[:, :N, :f_outs[-1]]
    return out


def init_params(key, input_shape, msg_hidden_dim, msg_out_size, num_layers):
    dims = [input_shape] + [msg_hidden_dim] * (num_layers - 1) + [msg_out_size]
    weights, biases = [], []
    for i in range(num_layers):
        key, wk = jax.random.split(key)
        fan_in, fan_out = dims[i], dims[i + 1]
        limit = (6.0 / (fan_in + fan_out)) ** 0.5               # glorot uniform (PyG default)
        weights.append(jax.random.uniform(wk, (fan_in, fan_out), jnp.float32,
                                          minval=-limit, maxval=limit))
        biases.append(jnp.zeros((1, fan_out), jnp.float32))
    return weights, biases


# ---------------------------------------------------------------------------
# Pure-JAX reference (for verification)
# ---------------------------------------------------------------------------
def reference_forward(x, adj, weights, biases):
    B, N, _ = adj.shape
    a_bin = (adj != 0.0).astype(jnp.float32)
    eye = jnp.eye(N, dtype=jnp.float32)[None]
    a_hat = jnp.where(eye > 0, 1.0, a_bin)
    deg = a_hat.sum(axis=1)                                    # [B, N] in-degree
    dinv = 1.0 / jnp.sqrt(deg)
    m = dinv[:, :, None] * jnp.swapaxes(a_hat, 1, 2) * dinv[:, None, :]
    h = x
    num_layers = len(weights)
    for i, (w, b) in enumerate(zip(weights, biases)):
        h = jnp.einsum("bij,bjf->bif", m, h @ w) + b
        if i + 1 < num_layers:
            h = jnp.where(h > 0.0, h, jnp.exp(jnp.minimum(h, 0.0)) - 1.0)
    return h


if __name__ == "__main__":
    # Small synthetic shapes consistent with the module's forward.
    B, N = 2, 8                     # batch of graphs, nodes per graph
    input_shape = 16                # per-node input feature dim
    msg_hidden_dim = 32
    msg_out_size = 32
    num_layers = 3

    key = jax.random.PRNGKey(0)
    kx, ka, kp = jax.random.split(key, 3)

    x = jax.random.normal(kx, (B, N, input_shape), jnp.float32)
    adj = (jax.random.uniform(ka, (B, N, N)) < 0.4).astype(jnp.float32)
    weights, biases = init_params(kp, input_shape, msg_hidden_dim,
                                  msg_out_size, num_layers)

    ref = reference_forward(x, adj, weights, biases)

    # Exact (f32 MXU) path.
    out = jax.block_until_ready(gat_comm_forward(x, adj, weights, biases))
    assert out.shape == (B, N, msg_out_size)
    assert jnp.allclose(out, ref, atol=1e-4, rtol=1e-4)

    # bf16 MXU path (recommended on v6e/v7x): only bf16 quantization error expected.
    out_bf16 = jax.block_until_ready(
        gat_comm_forward(x, adj, weights, biases, mxu_dtype=jnp.bfloat16))
    assert jnp.allclose(out_bf16, ref, atol=1e-1, rtol=1e-1)

    # Second config exercising multiple graphs per grid step / block-diagonal packing.
    B2 = 6
    kx2, ka2 = jax.random.split(jax.random.PRNGKey(1))
    x2 = jax.random.normal(kx2, (B2, N, input_shape), jnp.float32)
    adj2 = (jax.random.uniform(ka2, (B2, N, N)) < 0.4).astype(jnp.float32)
    out2 = jax.block_until_ready(gat_comm_forward(x2, adj2, weights, biases))
    ref2 = reference_forward(x2, adj2, weights, biases)
    assert out2.shape == (B2, N, msg_out_size)
    assert jnp.allclose(out2, ref2, atol=1e-4, rtol=1e-4)

    print("KERNEL_OK")
</pallas_src>

<mosaic_0001>
module attributes {stable_mosaic.version = 11 : i64} {
  func.func @_fused_gcn_kernel(%arg0: i32, %arg1: memref<2x8x8xbf16, #tpu.memory_space<vmem>>, %arg2: memref<2x8x16xf32, #tpu.memory_space<vmem>>, %arg3: memref<16x128xf32, #tpu.memory_space<vmem>>, %arg4: memref<1x128xf32, #tpu.memory_space<vmem>>, %arg5: memref<128x128xf32, #tpu.memory_space<vmem>>, %arg6: memref<1x128xf32, #tpu.memory_space<vmem>>, %arg7: memref<128x128xf32, #tpu.memory_space<vmem>>, %arg8: memref<1x128xf32, #tpu.memory_space<vmem>>, %arg9: memref<2x8x128xf32, #tpu.memory_space<vmem>>, %arg10: memref<16x16xf32, #tpu.memory_space<vmem>>) attributes {dimension_semantics = [#tpu.dimension_semantics<parallel>], iteration_bounds = array<i64: 1>, scalar_prefetch = 0 : i64, scratch_operands = 1 : i64, tpu.core_type = #tpu.core_type<tc>, window_params = [{transform_indices = @transform_0, window_bounds = array<i64: 2, 8, 8>}, {transform_indices = @transform_1, window_bounds = array<i64: 2, 8, 16>}, {pipeline_mode = #tpu.pipeline_mode<synchronous>, transform_indices = @transform_2, window_bounds = array<i64: 16, 128>}, {pipeline_mode = #tpu.pipeline_mode<synchronous>, transform_indices = @transform_3, window_bounds = array<i64: 1, 128>}, {pipeline_mode = #tpu.pipeline_mode<synchronous>, transform_indices = @transform_4, window_bounds = array<i64: 128, 128>}, {pipeline_mode = #tpu.pipeline_mode<synchronous>, transform_indices = @transform_5, window_bounds = array<i64: 1, 128>}, {pipeline_mode = #tpu.pipeline_mode<synchronous>, transform_indices = @transform_6, window_bounds = array<i64: 128, 128>}, {pipeline_mode = #tpu.pipeline_mode<synchronous>, transform_indices = @transform_7, window_bounds = array<i64: 1, 128>}, {transform_indices = @transform_8, window_bounds = array<i64: 2, 8, 128>}]} {
    %c0 = arith.constant 0 : index
    %c0_0 = arith.constant 0 : index
    %c0_1 = arith.constant 0 : index
    %0 = vector.load %arg1[%c0, %c0_0, %c0_1] : memref<2x8x8xbf16, #tpu.memory_space<vmem>>, vector<2x8x8xbf16>
    %1 = arith.extf %0 : vector<2x8x8xbf16> to vector<2x8x8xf32>
    %2 = tpu.iota {dimensions = array<i32: 0>} : vector<8x8xi32>
    %3 = tpu.iota {dimensions = array<i32: 1>} : vector<8x8xi32>
    %4 = arith.cmpi eq, %2, %3 : vector<8x8xi32>
    %5 = vector.shape_cast %4 : vector<8x8xi1> to vector<1x8x8xi1>
    %cst = arith.constant 1.000000e+00 : f32
    %6 = vector.shape_cast %5 : vector<1x8x8xi1> to vector<1x8x8xi1>
    %7 = vector.broadcast %6 : vector<1x8x8xi1> to vector<2x8x8xi1>
    %8 = vector.broadcast %cst : f32 to vector<2x8x8xf32>
    %9 = arith.select %7, %8, %1 : vector<2x8x8xi1>, vector<2x8x8xf32>
    %cst_2 = arith.constant dense<0.000000e+00> : vector<2x8xf32>
    %10 = vector.multi_reduction <add>, %9, %cst_2 [1] : vector<2x8x8xf32> to vector<2x8xf32>
    %11 = vector.shape_cast %10 : vector<2x8xf32> to vector<2x1x8xf32>
    %12 = math.rsqrt %11 : vector<2x1x8xf32>
    %13 = vector.shape_cast %4 : vector<8x8xi1> to vector<1x8x8xi1>
    %cst_3 = arith.constant 0.000000e+00 : f32
    %14 = vector.shape_cast %13 : vector<1x8x8xi1> to vector<1x8x8xi1>
    %15 = vector.broadcast %14 : vector<1x8x8xi1> to vector<2x8x8xi1>
    %16 = vector.shape_cast %12 : vector<2x1x8xf32> to vector<2x1x8xf32>
    %17 = vector.broadcast %16 : vector<2x1x8xf32> to vector<2x8x8xf32>
    %18 = vector.broadcast %cst_3 : f32 to vector<2x8x8xf32>
    %19 = arith.select %15, %17, %18 : vector<2x8x8xi1>, vector<2x8x8xf32>
    %cst_4 = arith.constant dense<0.000000e+00> : vector<2x8xf32>
    %20 = vector.multi_reduction <add>, %19, %cst_4 [2] : vector<2x8x8xf32> to vector<2x8xf32>
    %21 = vector.shape_cast %20 : vector<2x8xf32> to vector<2x8x1xf32>
    %22 = vector.broadcast %21 : vector<2x8x1xf32> to vector<2x8x8xf32>
    %23 = arith.mulf %22, %9 : vector<2x8x8xf32>
    %24 = vector.broadcast %12 : vector<2x1x8xf32> to vector<2x8x8xf32>
    %25 = arith.mulf %23, %24 : vector<2x8x8xf32>
    %cst_5 = arith.constant 0.000000e+00 : f32
    %26 = vector.broadcast %cst_5 : f32 to vector<16x16xf32>
    %c0_6 = arith.constant 0 : index
    %c0_7 = arith.constant 0 : index
    %27 = vector.load %arg10[%c0_6, %c0_7] : memref<16x16xf32, #tpu.memory_space<vmem>>, vector<16x16xf32>
    tpu.vector_store %arg10[%c0_6, %c0_7], %26 {strides = array<i32>} : memref<16x16xf32, #tpu.memory_space<vmem>>, vector<16x16xf32>,
    %28 = vector.extract_strided_slice %25 {offsets = [0, 0, 0], sizes = [1, 8, 8], strides = [1, 1, 1]} : vector<2x8x8xf32> to vector<1x8x8xf32>
    %29 = vector.shape_cast %28 : vector<1x8x8xf32> to vector<8x8xf32>
    %c0_8 = arith.constant 0 : index
    %c0_9 = arith.constant 0 : index
    %30 = vector.load %arg10[%c0_8, %c0_9] : memref<16x16xf32, #tpu.memory_space<vmem>>, vector<8x8xf32>
    tpu.vector_store %arg10[%c0_8, %c0_9], %29 {strides = array<i32>} : memref<16x16xf32, #tpu.memory_space<vmem>>, vector<8x8xf32>,
    %31 = vector.extract_strided_slice %25 {offsets = [1, 0, 0], sizes = [1, 8, 8], strides = [1, 1, 1]} : vector<2x8x8xf32> to vector<1x8x8xf32>
    %32 = vector.shape_cast %31 : vector<1x8x8xf32> to vector<8x8xf32>
    %c8 = arith.constant 8 : index
    %c8_10 = arith.constant 8 : index
    %33 = vector.load %arg10[%c8, %c8_10] : memref<16x16xf32, #tpu.memory_space<vmem>>, vector<8x8xf32>
    tpu.vector_store %arg10[%c8, %c8_10], %32 {strides = array<i32>} : memref<16x16xf32, #tpu.memory_space<vmem>>, vector<8x8xf32>,
    %c0_11 = arith.constant 0 : index
    %c0_12 = arith.constant 0 : index
    %c0_13 = arith.constant 0 : index
    %34 = vector.load %arg2[%c0_11, %c0_12, %c0_13] : memref<2x8x16xf32, #tpu.memory_space<vmem>>, vector<2x8x16xf32>
    %35 = vector.shape_cast %34 : vector<2x8x16xf32> to vector<16x16xf32>
    %c0_14 = arith.constant 0 : index
    %c0_15 = arith.constant 0 : index
    %36 = vector.load %arg3[%c0_14, %c0_15] : memref<16x128xf32, #tpu.memory_space<vmem>>, vector<16x128xf32>
    %c0_16 = arith.constant 0 : index
    %c0_17 = arith.constant 0 : index
    %37 = vector.load %arg4[%c0_16, %c0_17] : memref<1x128xf32, #tpu.memory_space<vmem>>, vector<1x128xf32>
    %cst_18 = arith.constant dense<0.000000e+00> : vector<16x128xf32>
    %38 = tpu.matmul %35, %36, %cst_18 {dimension_numbers = #tpu.dot_dimension_numbers<[1], [0], [0], [1], [0, 0, 1, 1], [], []>} : vector<16x16xf32>, vector<16x128xf32>, vector<16x128xf32> -> vector<16x128xf32>
    %c0_19 = arith.constant 0 : index
    %c0_20 = arith.constant 0 : index
    %39 = vector.load %arg10[%c0_19, %c0_20] : memref<16x16xf32, #tpu.memory_space<vmem>>, vector<16x16xf32>
    %cst_21 = arith.constant dense<0.000000e+00> : vector<16x128xf32>
    %40 = tpu.matmul %39, %38, %cst_21 {dimension_numbers = #tpu.dot_dimension_numbers<[0], [0], [1], [1], [0, 1, 1, 1], [], []>} : vector<16x16xf32>, vector<16x128xf32>, vector<16x128xf32> -> vector<16x128xf32>
    %41 = vector.broadcast %37 : vector<1x128xf32> to vector<16x128xf32>
    %42 = arith.addf %40, %41 : vector<16x128xf32>
    %cst_22 = arith.constant 0.000000e+00 : f32
    %43 = vector.broadcast %cst_22 : f32 to vector<16x128xf32>
    %44 = arith.cmpf ogt, %42, %43 : vector<16x128xf32>
    %cst_23 = arith.constant 0.000000e+00 : f32
    %45 = vector.broadcast %cst_23 : f32 to vector<16x128xf32>
    %46 = arith.minimumf %42, %45 : vector<16x128xf32>
    %47 = math.exp %46 : vector<16x128xf32>
    %cst_24 = arith.constant 1.000000e+00 : f32
    %48 = vector.broadcast %cst_24 : f32 to vector<16x128xf32>
    %49 = arith.subf %47, %48 : vector<16x128xf32>
    %50 = arith.select %44, %42, %49 : vector<16x128xi1>, vector<16x128xf32>
    %c0_25 = arith.constant 0 : index
    %c0_26 = arith.constant 0 : index
    %51 = vector.load %arg5[%c0_25, %c0_26] : memref<128x128xf32, #tpu.memory_space<vmem>>, vector<128x128xf32>
    %c0_27 = arith.constant 0 : index
    %c0_28 = arith.constant 0 : index
    %52 = vector.load %arg6[%c0_27, %c0_28] : memref<1x128xf32, #tpu.memory_space<vmem>>, vector<1x128xf32>
    %cst_29 = arith.constant dense<0.000000e+00> : vector<16x128xf32>
    %53 = tpu.matmul %50, %51, %cst_29 {dimension_numbers = #tpu.dot_dimension_numbers<[1], [0], [0], [1], [0, 0, 1, 1], [], []>} : vector<16x128xf32>, vector<128x128xf32>, vector<16x128xf32> -> vector<16x128xf32>
    %c0_30 = arith.constant 0 : index
    %c0_31 = arith.constant 0 : index
    %54 = vector.load %arg10[%c0_30, %c0_31] : memref<16x16xf32, #tpu.memory_space<vmem>>, vector<16x16xf32>
    %cst_32 = arith.constant dense<0.000000e+00> : vector<16x128xf32>
    %55 = tpu.matmul %54, %53, %cst_32 {dimension_numbers = #tpu.dot_dimension_numbers<[0], [0], [1], [1], [0, 1, 1, 1], [], []>} : vector<16x16xf32>, vector<16x128xf32>, vector<16x128xf32> -> vector<16x128xf32>
    %56 = vector.broadcast %52 : vector<1x128xf32> to vector<16x128xf32>
    %57 = arith.addf %55, %56 : vector<16x128xf32>
    %cst_33 = arith.constant 0.000000e+00 : f32
    %58 = vector.broadcast %cst_33 : f32 to vector<16x128xf32>
    %59 = arith.cmpf ogt, %57, %58 : vector<16x128xf32>
    %cst_34 = arith.constant 0.000000e+00 : f32
    %60 = vector.broadcast %cst_34 : f32 to vector<16x128xf32>
    %61 = arith.minimumf %57, %60 : vector<16x128xf32>
    %62 = math.exp %61 : vector<16x128xf32>
    %cst_35 = arith.constant 1.000000e+00 : f32
    %63 = vector.broadcast %cst_35 : f32 to vector<16x128xf32>
    %64 = arith.subf %62, %63 : vector<16x128xf32>
    %65 = arith.select %59, %57, %64 : vector<16x128xi1>, vector<16x128xf32>
    %c0_36 = arith.constant 0 : index
    %c0_37 = arith.constant 0 : index
    %66 = vector.load %arg7[%c0_36, %c0_37] : memref<128x128xf32, #tpu.memory_space<vmem>>, vector<128x128xf32>
    %c0_38 = arith.constant 0 : index
    %c0_39 = arith.constant 0 : index
    %67 = vector.load %arg8[%c0_38, %c0_39] : memref<1x128xf32, #tpu.memory_space<vmem>>, vector<1x128xf32>
    %cst_40 = arith.constant dense<0.000000e+00> : vector<16x128xf32>
    %68 = tpu.matmul %65, %66, %cst_40 {dimension_numbers = #tpu.dot_dimension_numbers<[1], [0], [0], [1], [0, 0, 1, 1], [], []>} : vector<16x128xf32>, vector<128x128xf32>, vector<16x128xf32> -> vector<16x128xf32>
    %c0_41 = arith.constant 0 : index
    %c0_42 = arith.constant 0 : index
    %69 = vector.load %arg10[%c0_41, %c0_42] : memref<16x16xf32, #tpu.memory_space<vmem>>, vector<16x16xf32>
    %cst_43 = arith.constant dense<0.000000e+00> : vector<16x128xf32>
    %70 = tpu.matmul %69, %68, %cst_43 {dimension_numbers = #tpu.dot_dimension_numbers<[0], [0], [1], [1], [0, 1, 1, 1], [], []>} : vector<16x16xf32>, vector<16x128xf32>, vector<16x128xf32> -> vector<16x128xf32>
    %71 = vector.broadcast %67 : vector<1x128xf32> to vector<16x128xf32>
    %72 = arith.addf %70, %71 : vector<16x128xf32>
    %73 = vector.shape_cast %72 : vector<16x128xf32> to vector<2x8x128xf32>
    %c0_44 = arith.constant 0 : index
    %c0_45 = arith.constant 0 : index
    %c0_46 = arith.constant 0 : index
    %74 = vector.load %arg9[%c0_44, %c0_45, %c0_46] : memref<2x8x128xf32, #tpu.memory_space<vmem>>, vector<2x8x128xf32>
    tpu.vector_store %arg9[%c0_44, %c0_45, %c0_46], %73 {strides = array<i32>} : memref<2x8x128xf32, #tpu.memory_space<vmem>>, vector<2x8x128xf32>,
    return
  }
  func.func @transform_0(%arg0: i32) -> (i32, i32, i32) {
    %c0_i32 = arith.constant 0 : i32
    %c0_i32_0 = arith.constant 0 : i32
    %c0_i32_1 = arith.constant 0 : i32
    return %arg0, %c0_i32, %c0_i32_0 : i32, i32, i32
  }
  func.func @transform_1(%arg0: i32) -> (i32, i32, i32) {
    %c0_i32 = arith.constant 0 : i32
    %c0_i32_0 = arith.constant 0 : i32
    %c0_i32_1 = arith.constant 0 : i32
    return %arg0, %c0_i32, %c0_i32_0 : i32, i32, i32
  }
  func.func @transform_2(%arg0: i32) -> (i32, i32) {
    %c0_i32 = arith.constant 0 : i32
    %c0_i32_0 = arith.constant 0 : i32
    %c0_i32_1 = arith.constant 0 : i32
    return %c0_i32, %c0_i32_0 : i32, i32
  }
  func.func @transform_3(%arg0: i32) -> (i32, i32) {
    %c0_i32 = arith.constant 0 : i32
    %c0_i32_0 = arith.constant 0 : i32
    %c0_i32_1 = arith.constant 0 : i32
    return %c0_i32, %c0_i32_0 : i32, i32
  }
  func.func @transform_4(%arg0: i32) -> (i32, i32) {
    %c0_i32 = arith.constant 0 : i32
    %c0_i32_0 = arith.constant 0 : i32
    %c0_i32_1 = arith.constant 0 : i32
    return %c0_i32, %c0_i32_0 : i32, i32
  }
  func.func @transform_5(%arg0: i32) -> (i32, i32) {
    %c0_i32 = arith.constant 0 : i32
    %c0_i32_0 = arith.constant 0 : i32
    %c0_i32_1 = arith.constant 0 : i32
    return %c0_i32, %c0_i32_0 : i32, i32
  }
  func.func @transform_6(%arg0: i32) -> (i32, i32) {
    %c0_i32 = arith.constant 0 : i32
    %c0_i32_0 = arith.constant 0 : i32
    %c0_i32_1 = arith.constant 0 : i32
    return %c0_i32, %c0_i32_0 : i32, i32
  }
  func.func @transform_7(%arg0: i32) -> (i32, i32) {
    %c0_i32 = arith.constant 0 : i32
    %c0_i32_0 = arith.constant 0 : i32
    %c0_i32_1 = arith.constant 0 : i32
    return %c0_i32, %c0_i32_0 : i32, i32
  }
  func.func @transform_8(%arg0: i32) -> (i32, i32, i32) {
    %c0_i32 = arith.constant 0 : i32
    %c0_i32_0 = arith.constant 0 : i32
    %c0_i32_1 = arith.constant 0 : i32
    return %arg0, %c0_i32, %c0_i32_0 : i32, i32, i32
  }
}

</mosaic_0001>

<bundles_post_ra>
// kernel: tpu_custom_call.1
= control target key start
LH: loop header
LB: loop body
LE: loop exit
PB: predicated region body
PF: predicated region fallthrough
CT: control target
= control target key end

     0   :  { %13 = vsyncpa [#allocation4], 0  ;;  %s795_s0 = inlined_call_operand.hbm [shape: bf16[2,8,8], index: 0, kind: input, shape index: {}]   ;;  %s796_s1 = inlined_call_operand.hbm [shape: f32[2,8,16], index: 1, kind: input, shape index: {}]   ;;  %s797_s2 = inlined_call_operand.hbm [shape: f32[16,128], index: 2, kind: input, shape index: {}]   ;;  %s798_s3 = inlined_call_operand.vmem [shape: f32[1,128], index: 3, kind: input, shape index: {}]   ;;  %s799_s4 = inlined_call_operand.hbm [shape: f32[128,128], index: 4, kind: input, shape index: {}]   ;;  %s800_s5 = inlined_call_operand.vmem [shape: f32[1,128], index: 5, kind: input, shape index: {}]   ;;  %s801_s6 = inlined_call_operand.hbm [shape: f32[128,128], index: 6, kind: input, shape index: {}]   ;;  %s802_s7 = inlined_call_operand.vmem [shape: f32[1,128], index: 7, kind: input, shape index: {}]   ;;  %s803_s8 = inlined_call_operand.hbm [shape: f32[2,8,128], index: 8, kind: output, shape index: {}]  }
   0x1   :  { %14 = vsyncpa [#allocation7], 0 }
   0x2   :  { %15 = vsyncpa [#allocation10], 0  ;;  %s34_s29 = sshll.u32 %s796_s1, 4  ;;  %s35_s29 = int_to_ptr.hbm [resolvable:$true] %s34_s29 }
   0x3   :  { %16 = vsyncpa [#allocation5], 0  ;;  %s667_s30 = smov [#allocation6]   ;;  %s62_s12 = sshll.u32 %s799_s4, 4  ;;  %s63_s12 = int_to_ptr.hbm [resolvable:$true] %s62_s12 }
   0x4   :  { %s36_s9 = sshll.u32 %s667_s30, 4  ;;  %s668_s13 = smov 128   ;;  %s37_s9 = int_to_ptr.vmem [resolvable:$true] %s36_s9 }
   0x5   :  { %s669_s14 = smov 8   ;;  %s670_s15 = smov [#allocation9]  }
   0x6   :  { %42 = dma.hbm_to_vmem [thread:$0]  %s35_s29, 256, %s37_s9, [#allocation7], %s668_s13, %s668_s13, %s669_s14  }
   0x7   :  { %s64_s16 = sshll.u32 %s670_s15, 4  ;;  %s21_s18 = sshll.u32 %s795_s0, 4  ;;  %s65_s16 = int_to_ptr.vmem [resolvable:$true] %s64_s16  ;;  %s22_s18 = int_to_ptr.hbm [resolvable:$true] %s21_s18 }
   0x8   :  { %70 = dma.hbm_to_vmem [thread:$0]  %s63_s12, 2048, %s65_s16, [#allocation10], %s668_s13, %s668_s13, %s669_s14  }
   0x9   :  { %s671_s4 = smov [#allocation3]   ;;  %s47_s22 = sshll.u32 %s797_s2, 4  ;;  %s48_s22 = int_to_ptr.hbm [resolvable:$true] %s47_s22 }
   0xa   :  { %s23_s19 = sshll.u32 %s671_s4, 4  ;;  %s672_s23 = smov 64   ;;  %s24_s19 = int_to_ptr.vmem [resolvable:$true] %s23_s19 }
   0xb   :  { %s673_s24 = smov 4   ;;  %s674_s25 = smov [#allocation8]  }
   0xc   :  { %29 = dma.hbm_to_vmem [thread:$0]  %s22_s18, 128, %s24_s19, [#allocation4], %s672_s23, %s672_s23, %s673_s24  }
   0xd   :  { %s49_s26 = sshll.u32 %s674_s25, 4  ;;  %s77_s28 = sshll.u32 %s801_s6, 4  ;;  %s50_s26 = int_to_ptr.vmem [resolvable:$true] %s49_s26  ;;  %s78_s28 = int_to_ptr.hbm [resolvable:$true] %s77_s28 }
   0xe   :  { %55 = dma.hbm_to_vmem [thread:$0]  %s48_s22, 256, %s50_s26, [#allocation7], %s668_s13, %s668_s13, %s669_s14  }
   0xf   :  { %s675_s29 = smov [#allocation11]  }
  0x10   :  { %s79_s30 = sshll.u32 %s675_s29, 4  ;;  %s80_s30 = int_to_ptr.vmem [resolvable:$true] %s79_s30 }
  0x11   :  { %85 = dma.hbm_to_vmem [thread:$0]  %s78_s28, 2048, %s80_s30, [#allocation10], %s668_s13, %s668_s13, %s669_s14  }
  0x12   :  { %659 = dma.done.wait [#allocation4], 128  }
  0x13   :  { %660 = vsyncadd [#allocation4], 4294967168 }
  0x14   :  { %661 = dma.done.wait [#allocation7], 512  }
  0x15   :  { %662 = vsyncadd [#allocation7], 4294966784 }
  0x16   :  { %663 = dma.done.wait [#allocation10], 4096  }
  0x17   :  { %664 = vsyncadd [#allocation10], 4294963200  ;;  %v112_v0 = vlaneseq  ;;  %v470_v3 = vld [vmem:[#allocation3] sm:$0xff]   ;;  %vm121_vm1 = vcmask 64512   ;;  %vm168_vm8 = vcmask 130048   ;;  %v676_v40 = vmov 0.0  }
  0x18   :  { %v472_v4 = vunpack.c.h.bf16 %v470_v3  ;;  %v471_v8 = vunpack.c.l.bf16 %v470_v3  ;;  %169 = vst.msk [vmem:[#allocation2] sm:$0xff] %vm168_vm8, %v676_v40  ;;  %v181_v48 = vld [vmem:[#allocation8 + $0x8] sm:$0xff]  ;;  %v180_v49 = vld [vmem:[#allocation8] sm:$0xff]  ;;  %v178_v50 = vld [vmem:[#allocation6] sm:$0xff]  ;;  %vm176_vm9 = vcmask 130112   ;;  %s677_s11 = smov [#allocation12]  }
  0x19   :  { %v113_v1 = vshrl.u32 %v112_v0, 7  ;;  %v115_v2 = vand.u32 127, %v112_v0  ;;  %170 = vst.msk [vmem:[#allocation2 + $0x8] sm:$0xff] %vm168_vm8, %v676_v40  ;;  %203 = vmatpush.msra.mxu0 %v181_v48  ;;  %v179_v51 = vld [vmem:[#allocation6 + $0x8] sm:$0xff]  ;;  %v305_v56 = vld [vmem:[#allocation9 + $0x78] sm:$0xff]  ;;  %v304_v57 = vld [vmem:[#allocation9 + $0x70] sm:$0xff] }
  0x1a   :  { %307 = vmatpush.msra.mxu2 %v305_v56  ;;  %v303_v58 = vld [vmem:[#allocation9 + $0x68] sm:$0xff]  ;;  %v302_v59 = vld [vmem:[#allocation9 + $0x60] sm:$0xff]  ;;  %v301_v60 = vld [vmem:[#allocation9 + $0x58] sm:$0xff]  ;;  %s440_s12 = sshll.u32 %s677_s11, 4  ;;  %s442_s17 = sshll.u32 %s803_s8, 4  ;;  %s441_s12 = int_to_ptr.vmem [resolvable:$true] %s440_s12  ;;  %s443_s17 = int_to_ptr.hbm [resolvable:$true] %s442_s17 }
  0x1b   :  { %vm116_vm0 = vcmp.eq.s32.totalorder %v113_v1, %v115_v2  ;;  %204 = vmatpush.msra.mxu0 %v180_v49  ;;  %v300_v61 = vld [vmem:[#allocation9 + $0x50] sm:$0xff]  ;;  %v299_v62 = vld [vmem:[#allocation9 + $0x48] sm:$0xff]  ;;  %v298_v1 = vld [vmem:[#allocation9 + $0x40] sm:$0xff] }
  0x1c   :  { %v120_v5 = vsel %vm116_vm0, 1.0, %v472_v4  ;;  %v119_v10 = vsel %vm116_vm0, 1.0, %v471_v8  ;;  %457 = vmatmul.msk.f32.vlgmr.msra.gmra.mxu0 %vm168_vm8, %v178_v50  ;;  %308 = vmatpush.msra.mxu2 %v304_v57  ;;  %v297_v2 = vld [vmem:[#allocation9 + $0x38] sm:$0xff]  ;;  %v296_v3 = vld [vmem:[#allocation9 + $0x30] sm:$0xff]  ;;  %v295_v4 = vld [vmem:[#allocation9 + $0x28] sm:$0xff] }
  0x1d   :  { %v129_v6 = vsel %vm121_vm1, %v120_v5, 0.0  ;;  %v122_v11 = vsel %vm121_vm1, %v119_v10, 0.0  ;;  %v291_v8 = vld [vmem:[#allocation9 + $0x8] sm:$0xff]  ;;  %v370_v40 = vld [vmem:[#allocation11 + $0x10] sm:$0xff] }
  0x1e   :  { %v130_v7 = vrot.slane %v129_v6, 4  ;;  %v123_v13 = vrot.slane %v122_v11, 4  ;;  %309 = vmatpush.msra.mxu2 %v303_v58 }
  0x20   :  { %v131_v9 = vadd.f32 %v130_v7, %v129_v6  ;;  %v124_v15 = vadd.f32 %v123_v13, %v122_v11  ;;  %310 = vmatpush.msra.mxu2 %v302_v59  ;;  %v293_v6 = vld [vmem:[#allocation9 + $0x18] sm:$0xff]  ;;  %v292_v7 = vld [vmem:[#allocation9 + $0x10] sm:$0xff] }
  0x22   :  { %v132_v12 = vrot.slane %v131_v9, 2  ;;  %v125_v17 = vrot.slane %v124_v15, 2  ;;  %311 = vmatpush.msra.mxu2 %v301_v60  ;;  %v502_v60 = vld [vmem:[%s802_s7] ss:$0 sm:$0xff] }
  0x24   :  { %v133_v14 = vadd.f32 %v132_v12, %v131_v9  ;;  %v126_v19 = vadd.f32 %v125_v17, %v124_v15  ;;  %458 = vmatmul.msk.f32.gmra.mxu0 %vm168_vm8, %v179_v51  ;;  %312 = vmatpush.msra.mxu2 %v300_v61  ;;  %v290_v9 = vld [vmem:[#allocation9] sm:$0xff] }
  0x26   :  { %v134_v16 = vrot.slane %v133_v14, 1  ;;  %v127_v20 = vrot.slane %v126_v19, 1  ;;  %313 = vmatpush.msra.mxu2 %v299_v62 }
  0x28   :  { %v135_v18 = vadd.f32 %v134_v16, %v133_v14  ;;  %v128_v21 = vadd.f32 %v127_v20, %v126_v19  ;;  %314 = vmatpush.msra.mxu2 %v298_v1 }
  0x2a   :  { %503 = vrsqrt.f32 %v135_v18  ;;  %vm152_vm2 = vweird.f32 %v135_v18  ;;  %vm142_vm5 = vweird.f32 %v128_v21  ;;  %315 = vmatpush.msra.mxu2 %v297_v2 }
  0x2b   :  { %505 = vrsqrt.f32 %v128_v21 }
  0x2c   :  { %316 = vmatpush.msra.mxu2 %v296_v3 }
  0x2e   :  { %317 = vmatpush.msra.mxu2 %v295_v4 }
  0x30   :  { %v504_v22 = vpop.eup %503 }
  0x31   :  { %v147_v23 = vmul.f32 %v504_v22, %v135_v18  ;;  %v506_v25 = vpop.eup %505  ;;  %vm153_vm3 = vweird.f32 %v504_v22 }
  0x32   :  { %v137_v27 = vmul.f32 %v506_v25, %v128_v21  ;;  %vm154_vm4 = vmor %vm152_vm2, %vm153_vm3  ;;  %vm143_vm6 = vweird.f32 %v506_v25 }
  0x33   :  { %v148_v24 = vmul.f32 %v504_v22, %v147_v23  ;;  %vm144_vm7 = vmor %vm142_vm5, %vm143_vm6 }
  0x34   :  { %v138_v29 = vmul.f32 %v506_v25, %v137_v27  ;;  %v381_v27 = vld [vmem:[#allocation11 + $0x68] sm:$0xff] }
  0x35   :  { %v149_v26 = vmul.f32 0.5, %v148_v24 }
  0x36   :  { %v139_v31 = vmul.f32 0.5, %v138_v29  ;;  %v379_v29 = vld [vmem:[#allocation11 + $0x58] sm:$0xff] }
  0x37   :  { %v150_v28 = vsub.f32 1.5, %v149_v26  ;;  %v382_v26 = vld [vmem:[#allocation11 + $0x70] sm:$0xff] }
  0x38   :  { %v140_v33 = vsub.f32 1.5, %v139_v31  ;;  %v377_v31 = vld [vmem:[#allocation11 + $0x48] sm:$0xff] }
  0x39   :  { %v151_v30 = vmul.f32 %v504_v22, %v150_v28  ;;  %v380_v28 = vld [vmem:[#allocation11 + $0x60] sm:$0xff] }
  0x3a   :  { %v141_v36 = vmul.f32 %v506_v25, %v140_v33 }
  0x3b   :  { %v155_v32 = vsel %vm154_vm4, %v504_v22, %v151_v30  ;;  %v378_v30 = vld [vmem:[#allocation11 + $0x50] sm:$0xff] }
  0x3c   :  { %v157_v34 = vsel %vm116_vm0, %v155_v32, 0.0  ;;  %v145_v37 = vsel %vm144_vm7, %v506_v25, %v141_v36  ;;  %v383_v25 = vld [vmem:[#allocation11 + $0x78] sm:$0xff]  ;;  %v374_v36 = vld [vmem:[#allocation11 + $0x30] sm:$0xff] }
  0x3d   :  { %v161_v35 = vsel %vm121_vm1, %v157_v34, 0.0  ;;  %v156_v38 = vsel %vm116_vm0, %v145_v37, 0.0  ;;  %385 = vmatpush.msrb.mxu0 %v383_v25  ;;  %v376_v34 = vld [vmem:[#allocation11 + $0x40] sm:$0xff] }
  0x3e   :  { %162 = vadd.xlane.f32.xlu0 %v161_v35  ;;  %v158_v39 = vsel %vm121_vm1, %v156_v38, 0.0  ;;  %v375_v35 = vld [vmem:[#allocation11 + $0x38] sm:$0xff]  ;;  %v372_v38 = vld [vmem:[#allocation11 + $0x20] sm:$0xff] }
  0x3f   :  { %386 = vmatpush.msrb.mxu0 %v382_v26 }
  0x41   :  { %387 = vmatpush.msrb.mxu0 %v381_v27 }
  0x43   :  { %388 = vmatpush.msrb.mxu0 %v380_v28 }
  0x45   :  { %389 = vmatpush.msrb.mxu0 %v379_v29 }
  0x46   :  { %159 = vadd.xlane.f32.xlu0 %v158_v39  ;;  %v371_v39 = vld [vmem:[#allocation11 + $0x18] sm:$0xff] }
  0x47   :  { %390 = vmatpush.msrb.mxu0 %v378_v30 }
  0x49   :  { %391 = vmatpush.msrb.mxu0 %v377_v31 }
  0x4b   :  { %392 = vmatpush.msrb.mxu0 %v376_v34 }
  0x4d   :  { %393 = vmatpush.msrb.mxu0 %v375_v35 }
  0x4f   :  { %394 = vmatpush.msrb.mxu0 %v374_v36 }
  0x99   :  { %v206_v54 = vpop.f32.mrf.mxu0 }
  0xa1   :  { %v209_v55 = vpop.f32.mrf.mxu0 }
  0xa2   :  { %269 = vmatpush.msra.mxu1 %v209_v55 }
  0xa4   :  { %270 = vmatpush.msra.mxu1 %v206_v54 }
  0xb1   :  { %v163_v41 = vpop.xlane.xlu0 %162 }
  0xb2   :  { %v165_v42 = vmul.f32 %v163_v41, %v120_v5  ;;  %v294_v5 = vld [vmem:[#allocation9 + $0x20] sm:$0xff]  ;;  %v369_v41 = vld [vmem:[#allocation11 + $0x8] sm:$0xff] }
  0xb3   :  { %318 = vmatpush.msra.mxu2 %v294_v5 }
  0xb4   :  { %v167_v43 = vmul.f32 %v165_v42, %v155_v32  ;;  %v368_v42 = vld [vmem:[#allocation11] sm:$0xff] }
  0xb5   :  { %319 = vmatpush.msra.mxu2 %v293_v6 }
  0xb6   :  { %173 = vrot.lane.b32.xlu1 %v167_v43, %s669_s14  ;;  %v501_v43 = vld [vmem:[%s800_s5] ss:$0 sm:$0xff] }
  0xb7   :  { %320 = vmatpush.msra.mxu2 %v292_v7 }
  0xb9   :  { %v160_v44 = vpop.xlane.xlu0 %159  ;;  %321 = vmatpush.msra.mxu2 %v291_v8 }
  0xba   :  { %v164_v45 = vmul.f32 %v160_v44, %v119_v10  ;;  %v500_v10 = vld [vmem:[%s798_s3] ss:$0 sm:$0xff] }
  0xbb   :  { %322 = vmatpush.msra.mxu2 %v290_v9 }
  0xbc   :  { %v166_v46 = vmul.f32 %v164_v45, %v145_v37  ;;  %v373_v37 = vld [vmem:[#allocation11 + $0x28] sm:$0xff] }
  0xbd   :  { %395 = vmatpush.msrb.mxu0 %v373_v37 }
  0xbe   :  { %171 = vst.msk [vmem:[#allocation2] sm:$0xff] %vm121_vm1, %v166_v46 }
  0xbf   :  { %396 = vmatpush.msrb.mxu0 %v372_v38 }
  0xc1   :  { %397 = vmatpush.msrb.mxu0 %v371_v39 }
  0xc3   :  { %398 = vmatpush.msrb.mxu0 %v370_v40 }
  0xc5   :  { %v212_v47 = vld [vmem:[#allocation2] sm:$0xff]  ;;  %399 = vmatpush.msrb.mxu0 %v369_v41 }
  0xc7   :  { %400 = vmatpush.msrb.mxu0 %v368_v42 }
  0xeb   :  { %217 = vxpose.xlu1.b32.start [1/2] (short) (narrow) %v212_v47, 16 }
 0x128   :  { %v174_v52 = vpop.permute.xlu1 %173 }
 0x129   :  { %177 = vst.msk [vmem:[#allocation2 + $0x8] sm:$0xff] %vm176_vm9, %v174_v52 }
 0x130   :  { %v213_v53 = vld [vmem:[#allocation2 + $0x8] sm:$0xff] }
 0x131   :  { %218 = vxpose.xlu1.b32.end [2/2] (short) (narrow) %v213_v53, 16 }
 0x1cd   :  { %v764_v63 = vpop.trf.xlu1 }
 0x1ce   :  { %459 = vmatmul.msk.f32.vlgmr.msra.gmra.mxu1 %vm168_vm8, %v764_v63 }
 0x1d5   :  { %v768_v0 = vpop.trf.xlu1 }
 0x1d6   :  { %460 = vmatmul.msk.f32.gmra.mxu1 %vm168_vm8, %v768_v0 }
 0x24b   :  { %v272_v11 = vpop.f32.mrf.mxu1 }
 0x24c   :  { %v273_v12 = vadd.f32 %v500_v10, %v272_v11 }
 0x24e   :  { %v280_v13 = vmin.f32 %v273_v12, 0.0  ;;  %vm278_vm10 = vcmp.gt.f32.partialorder %v273_v12, 0.0 }
 0x250   :  { %v282_v14 = vmul.f32 1.442695, %v280_v13 }
 0x252   :  { %507 = vpow2.f32 %v282_v14 }
 0x253   :  { %v275_v15 = vpop.f32.mrf.mxu1 }
 0x254   :  { %v276_v16 = vadd.f32 %v500_v10, %v275_v15 }
 0x256   :  { %v281_v17 = vmin.f32 %v276_v16, 0.0  ;;  %vm279_vm11 = vcmp.gt.f32.partialorder %v276_v16, 0.0 }
 0x258   :  { %v508_v18 = vpop.eup %507  ;;  %v284_v19 = vmul.f32 1.442695, %v281_v17 }
 0x259   :  { %v461_v20 = vadd.f32 -1.0, %v508_v18 }
 0x25a   :  { %509 = vpow2.f32 %v284_v19 }
 0x25b   :  { %v288_v21 = vsel %vm278_vm10, %v273_v12, %v461_v20 }
 0x25c   :  { %323 = vmatmul.f32.vlgmr.msra.gmra.mxu2 %v288_v21 }
 0x260   :  { %v510_v22 = vpop.eup %509 }
 0x261   :  { %v462_v23 = vadd.f32 -1.0, %v510_v22 }
 0x263   :  { %v289_v24 = vsel %vm279_vm11, %v276_v16, %v462_v23 }
 0x264   :  { %326 = vmatmul.f32.gmra.mxu2 %v289_v24 }
 0x2df   :  { %v324_v32 = vpop.f32.mrf.mxu2 }
 0x2e7   :  { %v327_v33 = vpop.f32.mrf.mxu2 }
 0x2e8   :  { %347 = vmatpush.msra.mxu3 %v327_v33 }
 0x2ea   :  { %348 = vmatpush.msra.mxu3 %v324_v32 }
 0x2eb   :  { %463 = vmatmul.msk.f32.vlgmr.msra.gmra.mxu3 %vm168_vm8, %v764_v63 }
 0x2ec   :  { %473 = vmatpush.msrb.mxu3 %v383_v25 }
 0x2ee   :  { %474 = vmatpush.msrb.mxu3 %v382_v26 }
 0x2f0   :  { %475 = vmatpush.msrb.mxu3 %v381_v27 }
 0x2f2   :  { %476 = vmatpush.msrb.mxu3 %v380_v28 }
 0x2f3   :  { %464 = vmatmul.msk.f32.gmra.mxu3 %vm168_vm8, %v768_v0 }
 0x2f4   :  { %477 = vmatpush.msrb.mxu3 %v379_v29 }
 0x2f6   :  { %478 = vmatpush.msrb.mxu3 %v378_v30 }
 0x2f8   :  { %479 = vmatpush.msrb.mxu3 %v377_v31 }
 0x2fa   :  { %480 = vmatpush.msrb.mxu3 %v376_v34 }
 0x2fc   :  { %481 = vmatpush.msrb.mxu3 %v375_v35 }
 0x2fe   :  { %482 = vmatpush.msrb.mxu3 %v374_v36 }
 0x300   :  { %483 = vmatpush.msrb.mxu3 %v373_v37 }
 0x302   :  { %484 = vmatpush.msrb.mxu3 %v372_v38 }
 0x304   :  { %485 = vmatpush.msrb.mxu3 %v371_v39 }
 0x306   :  { %486 = vmatpush.msrb.mxu3 %v370_v40 }
 0x308   :  { %487 = vmatpush.msrb.mxu3 %v369_v41 }
 0x30a   :  { %488 = vmatpush.msrb.mxu3 %v368_v42 }
 0x36e   :  { %v350_v44 = vpop.f32.mrf.mxu3 }
 0x36f   :  { %v351_v45 = vadd.f32 %v501_v43, %v350_v44 }
 0x371   :  { %v358_v46 = vmin.f32 %v351_v45, 0.0  ;;  %vm356_vm12 = vcmp.gt.f32.partialorder %v351_v45, 0.0 }
 0x373   :  { %v360_v47 = vmul.f32 1.442695, %v358_v46 }
 0x375   :  { %511 = vpow2.f32 %v360_v47 }
 0x376   :  { %v353_v48 = vpop.f32.mrf.mxu3 }
 0x377   :  { %v354_v49 = vadd.f32 %v501_v43, %v353_v48 }
 0x379   :  { %v359_v50 = vmin.f32 %v354_v49, 0.0  ;;  %vm357_vm13 = vcmp.gt.f32.partialorder %v354_v49, 0.0 }
 0x37b   :  { %v512_v51 = vpop.eup %511  ;;  %v362_v52 = vmul.f32 1.442695, %v359_v50 }
 0x37c   :  { %v465_v53 = vadd.f32 -1.0, %v512_v51 }
 0x37d   :  { %513 = vpow2.f32 %v362_v52 }
 0x37e   :  { %v366_v54 = vsel %vm356_vm12, %v351_v45, %v465_v53 }
 0x37f   :  { %401 = vmatmul.f32.vlgmr.msrb.gmra.mxu0 %v366_v54 }
 0x383   :  { %v514_v55 = vpop.eup %513 }
 0x384   :  { %v466_v56 = vadd.f32 -1.0, %v514_v55 }
 0x386   :  { %v367_v57 = vsel %vm357_vm13, %v354_v49, %v466_v56 }
 0x387   :  { %404 = vmatmul.f32.vlgmr.msrb.gmra.mxu3 %v367_v57 }
 0x3fc   :  { %v402_v59 = vpop.f32.mrf.mxu0 }
 0x40a   :  { %v405_v58 = vpop.f32.mrf.mxu3 }
 0x40b   :  { %425 = vmatpush.msrb.mxu1 %v405_v58 }
 0x40d   :  { %426 = vmatpush.msrb.mxu1 %v402_v59 }
 0x40e   :  { %467 = vmatmul.msk.f32.vlgmr.msrb.gmra.mxu1 %vm168_vm8, %v764_v63 }
 0x416   :  { %468 = vmatmul.msk.f32.gmra.mxu1 %vm168_vm8, %v768_v0 }
 0x48b   :  { %v428_v61 = vpop.f32.mrf.mxu1 }
 0x48c   :  { %v429_v62 = vadd.f32 %v502_v60, %v428_v61 }
 0x48e   :  { %434 = vst [vmem:[#allocation12] sm:$0xff] %v429_v62 }
 0x493   :  { %v431_v1 = vpop.f32.mrf.mxu1 }
 0x494   :  { %v432_v2 = vadd.f32 %v502_v60, %v431_v1 }
 0x496   :  { %435 = vst [vmem:[#allocation12 + $0x8] sm:$0xff] %v432_v2 }
 0x497   :  { %448 = dma.vmem_to_hbm [thread:$0]  %s441_s12, 256, %s443_s17, [#allocation5], %s668_s13, %s668_s13, %s669_s14  }
 0x498   :  { %665 = dma.done.wait [#allocation5], 256  }
 0x499   :  { %666 = vsyncadd [#allocation5], 4294967040 }
 0x49a   :  { %453 = vsyncpa [#allocation4], 1 }
 0x49b   :  { %454 = vsyncpa [#allocation7], 1 }
 0x49c   :  { %455 = vsyncpa [#allocation10], 1 }
 0x49d   :  { %456 = vsyncpa [#allocation5], 1 }

</bundles_post_ra>
